<compile_context>
chip_gen: v7x
topology: tpu7x:2x2x1
jax: 0.10.0
libtpu: 0.0.40
codegen_flags: <defaults>
</compile_context>

<pallas_src>
import functools
from typing import NamedTuple

import jax
import jax.numpy as jnp
from jax.experimental import pallas as pl
from jax.experimental.pallas import tpu as pltpu


_HID = 128   # hidden width of body layers 1/2
_FEAT = 64   # feature width (body output)


class IcmNetworkOutput(NamedTuple):
    pi_logits: jax.Array
    features: jax.Array
    pred_features: jax.Array


def _round_up(x, m):
    return ((x + m - 1) // m) * m


def _icm_kernel(num_actions, tile_b,
                s_ref, a_ref,
                w1_ref, b1_ref, w2_ref, b2_ref, w3_ref, b3_ref, w_act_ref,
                slab_ref):
    """One batch tile.

    s_ref    : [2, T, D] bf16   (index 0 = s_tm1, index 1 = s_t)
    a_ref    : [T, 1]    int32
    w3_ref   : [128, 128+2A]    precomposed [w3 | w3@w_head | w3@w_it]
    slab_ref : [T, slab_w]      lanes = [features_t | pred_features_t | pi_logits | 0-pad]
    """
    f32 = jnp.float32
    cdt = w1_ref.dtype                         # matmul compute dtype (bf16)
    d = s_ref.shape[-1]

    # ---- fused trunk: one 3-matmul pass over BOTH states (M = 2*T) ----------
    # tile_b is a multiple of 16, so the (2, T, D) -> (2T, D) merge is layout-free.
    x = s_ref[...].reshape(2 * tile_b, d)                                     # [2T, D]
    h = jnp.dot(x, w1_ref[...], preferred_element_type=f32) + b1_ref[...]
    h = jnp.maximum(h, 0.0).astype(cdt)
    h = jnp.dot(h, w2_ref[...], preferred_element_type=f32) + b2_ref[...]
    h = jnp.maximum(h, 0.0).astype(cdt)
    # layer-3 + forward_net + inverse_net folded into one matmul (exact: no ReLU after L3)
    g = jnp.dot(h, w3_ref[...], preferred_element_type=f32) + b3_ref[...]     # [2T, 128+2A]

    g_tm1 = g[:tile_b]                         # rows computed from s_tm1
    g_t = g[tile_b:]                           # rows computed from s_t

    feat_t = g_t[:, :_FEAT]                                   # features(s_t)          [T, 64]
    head_f = g_tm1[:, _FEAT:2 * _FEAT]                        # f_tm1 @ wf_feat + bf   [T, 64]
    head_i = g_tm1[:, 2 * _FEAT:2 * _FEAT + num_actions]      # f_tm1 @ wi_tm1 + bi    [T, A]
    it_t = g_t[:, 2 * _FEAT + num_actions:]                   # f_t  @ wi_t            [T, A]

    # ---- action contribution: one-hot built once (iota compare) + one small MXU push ----
    a_pad = w_act_ref.shape[0]                 # num_actions rounded up to 16 (zero rows)
    ids = jax.lax.broadcasted_iota(jnp.int32, (tile_b, a_pad), 1)
    onehot = (ids == a_ref[...]).astype(cdt)                                  # [T, A_pad]
    act = jnp.dot(onehot, w_act_ref[...], preferred_element_type=f32)         # [T, 64]

    pred = head_f + act                        # forward model
    pi = head_i + it_t                         # inverse model

    # ---- one lane-dense (multiple-of-128 wide) packed output slab -----------
    pad_w = slab_ref.shape[-1] - (2 * _FEAT + num_actions)
    parts = [feat_t, pred, pi]
    if pad_w > 0:
        parts.append(jnp.zeros((tile_b, pad_w), f32))
    slab_ref[...] = jnp.concatenate(parts, axis=-1).astype(slab_ref.dtype)


def _choose_tile(batch, d, tile_b, cdtype):
    """16-aligned batch tile; keep >=2 grid steps when the batch allows it (v7x has
    2 TensorCores); cap so double-buffered input streams stay well inside VMEM."""
    t = _round_up(max(min(tile_b, batch), 1), 16)
    if batch > 16:
        t = min(t, _round_up((batch + 1) // 2, 16))
    row_bytes = 2 * d * jnp.dtype(cdtype).itemsize          # both states, one batch row
    max_rows = (16 * 1024 * 1024) // max(2 * row_bytes, 1)  # 2x for double buffering
    max_rows = max(16, (max_rows // 16) * 16)
    return max(16, min(t, max_rows))


def icm_mlp_net_forward(s_tm1, a_tm1, s_t, params, *, tile_b=1024,
                        out_dtype=jnp.float32,
                        vmem_limit_bytes=48 * 1024 * 1024):
    """Pallas forward pass. s_tm1, s_t: [B, D] float32; a_tm1: [B] int.

    `params` must come from `pack_icm_params`. `out_dtype=jnp.bfloat16` halves
    output HBM writeback (useful on v5e); `vmem_limit_bytes` may be raised on
    v6e (128 MiB physical) when using very large tiles / observation widths.
    """
    batch, d = s_tm1.shape
    num_actions = (params["w3_big"].shape[1] - 2 * _FEAT) // 2   # static, from packing
    cdtype = params["w1"].dtype
    slab_w = _round_up(2 * _FEAT + num_actions, 128)

    tile = _choose_tile(batch, d, tile_b, cdtype)
    b_pad = _round_up(batch, tile)
    pad = b_pad - batch
    grid = (b_pad // tile,)

    # Single [2, B, D] input stream (no in-kernel concat, one input DMA stream).
    s_pair = jnp.pad(jnp.stack([s_tm1, s_t], axis=0).astype(cdtype),
                     ((0, 0), (0, pad), (0, 0)))
    a2d = jnp.pad(a_tm1.astype(jnp.int32), ((0, pad),)).reshape(b_pad, 1)

    weights = (params["w1"], params["b1"], params["w2"], params["b2"],
               params["w3_big"], params["b3_big"], params["w_act"])

    def _resident(p):   # full array, constant block index -> DMA'd once, stays VMEM-resident
        return pl.BlockSpec(tuple(p.shape), lambda i: (0, 0))

    in_specs = [
        pl.BlockSpec((2, tile, d), lambda i: (0, i, 0)),     # both states, one stream
        pl.BlockSpec((tile, 1), lambda i: (i, 0)),           # actions
    ] + [_resident(p) for p in weights]
    out_specs = pl.BlockSpec((tile, slab_w), lambda i: (i, 0))
    out_shape = jax.ShapeDtypeStruct((b_pad, slab_w), out_dtype)

    a_pad_rows = params["w_act"].shape[0]
    flops = grid[0] * 2 * (2 * tile) * (
        d * _HID + _HID * _HID + _HID * (2 * _FEAT + 2 * num_actions)
    ) + grid[0] * 2 * tile * a_pad_rows * _FEAT
    bytes_accessed = (
        s_pair.size * s_pair.dtype.itemsize
        + a2d.size * a2d.dtype.itemsize
        + sum(int(p.size) * p.dtype.itemsize for p in weights)
        + b_pad * slab_w * jnp.dtype(out_dtype).itemsize)

    kernel = functools.partial(_icm_kernel, num_actions, tile)

    slab = pl.pallas_call(
        kernel,
        grid=grid,
        in_specs=in_specs,
        out_specs=out_specs,
        out_shape=out_shape,
        compiler_params=pltpu.CompilerParams(
            dimension_semantics=("parallel",),
            vmem_limit_bytes=vmem_limit_bytes,   # <=48 MiB stays safe on v7x's 64 MiB/TC
        ),
        cost_estimate=pl.CostEstimate(
            flops=int(flops), transcendentals=0, bytes_accessed=int(bytes_accessed)),
    )(s_pair, a2d, *weights)

    slab = slab.astype(jnp.float32)
    return IcmNetworkOutput(
        pi_logits=slab[:batch, 2 * _FEAT:2 * _FEAT + num_actions],
        features=slab[:batch, :_FEAT],
        pred_features=slab[:batch, _FEAT:2 * _FEAT],
    )


def init_icm_params(key, input_shape, num_actions):
    """Canonical f32 parameters mirroring the PyTorch module (nn.Linear defaults,
    uniform +/- 1/sqrt(fan_in)); weights stored [in, out] (transpose of PyTorch)."""
    def linear(key, fan_in, fan_out):
        kw, kb = jax.random.split(key)
        bound = 1.0 / jnp.sqrt(fan_in)
        w = jax.random.uniform(kw, (fan_in, fan_out), jnp.float32, -bound, bound)
        b = jax.random.uniform(kb, (1, fan_out), jnp.float32, -bound, bound)
        return w, b

    k1, k2, k3, kf, ki = jax.random.split(key, 5)
    w1, b1 = linear(k1, input_shape, _HID)
    w2, b2 = linear(k2, _HID, _HID)
    w3, b3 = linear(k3, _HID, _FEAT)
    wf, bf = linear(kf, _FEAT + num_actions, _FEAT)    # forward_net
    wi, bi = linear(ki, 2 * _FEAT, num_actions)        # inverse_net
    return {"w1": w1, "b1": b1, "w2": w2, "b2": b2, "w3": w3, "b3": b3,
            "wf": wf, "bf": bf, "wi": wi, "bi": bi}


def pack_icm_params(params, *, compute_dtype=jnp.bfloat16):
    """Pack canonical f32 params for the kernel.

    Layer-3 + forward_net + inverse_net are algebraically folded into one matmul
    from the 128-wide hidden (exact: no ReLU after layer 3). Precomposition is
    done in f32, then cast to bf16 once:
      w3_big = [w3 | w3 @ [wf_feat|wi_tm1] | w3 @ wi_t]                 [128, 128+2A]
      b3_big = [b3 | b3 @ [wf_feat|wi_tm1] + [bf|bi] | b3 @ wi_t]       [1,   128+2A]
    The one-hot(action) rows of forward_net (wf_act) are kept separate, padded
    to a multiple of 16 rows, and consumed by a tiny one-hot matmul in the kernel.
    """
    num_actions = params["wi"].shape[1]
    wf_feat, wf_act = params["wf"][:_FEAT], params["wf"][_FEAT:]
    wi_tm1, wi_t = params["wi"][:_FEAT], params["wi"][_FEAT:]

    w_head = jnp.concatenate([wf_feat, wi_tm1], axis=1)               # [64, 64+A]
    b_head = jnp.concatenate([params["bf"], params["bi"]], axis=1)    # [1, 64+A]

    w3, b3 = params["w3"], params["b3"]
    w3_big = jnp.concatenate([w3, w3 @ w_head, w3 @ wi_t], axis=1)            # [128, 128+2A]
    b3_big = jnp.concatenate([b3, b3 @ w_head + b_head, b3 @ wi_t], axis=1)   # [1, 128+2A]

    a_pad = max(16, _round_up(num_actions, 16))
    w_act = jnp.zeros((a_pad, _FEAT), jnp.float32).at[:num_actions].set(wf_act)

    return {
        "w1": params["w1"].astype(compute_dtype), "b1": params["b1"],
        "w2": params["w2"].astype(compute_dtype), "b2": params["b2"],
        "w3_big": w3_big.astype(compute_dtype), "b3_big": b3_big,
        "w_act": w_act.astype(compute_dtype),
    }


def _reference_forward(s_tm1, a_tm1, s_t, params):
    """Pure-JAX f32 reference with the exact PyTorch-module semantics."""
    num_actions = params["wi"].shape[1]

    def body(x):
        h = jnp.maximum(x @ params["w1"] + params["b1"], 0.0)
        h = jnp.maximum(h @ params["w2"] + params["b2"], 0.0)
        return h @ params["w3"] + params["b3"]

    f_tm1 = body(s_tm1)
    f_t = body(s_t)
    onehot = jax.nn.one_hot(a_tm1, num_actions, dtype=jnp.float32)
    pred = jnp.concatenate([f_tm1, onehot], -1) @ params["wf"] + params["bf"]
    pi = jnp.concatenate([f_tm1, f_t], -1) @ params["wi"] + params["bi"]
    return pi, f_t, pred


if __name__ == "__main__":
    batch = 8
    input_shape = 16
    num_actions = 4

    key = jax.random.PRNGKey(0)
    k_params, k_s1, k_s2, k_a = jax.random.split(key, 4)

    params = init_icm_params(k_params, input_shape, num_actions)
    kparams = pack_icm_params(params)

    s_tm1 = jax.random.normal(k_s1, (batch, input_shape), jnp.float32)
    s_t = jax.random.normal(k_s2, (batch, input_shape), jnp.float32)
    a_tm1 = jax.random.randint(k_a, (batch,), 0, num_actions, jnp.int32)

    out = jax.jit(icm_mlp_net_forward)(s_tm1, a_tm1, s_t, kparams)
    jax.block_until_ready(out)

    ref_pi, ref_feat, ref_pred = _reference_forward(s_tm1, a_tm1, s_t, params)
    assert out.pi_logits.shape == (batch, num_actions)
    assert out.features.shape == (batch, _FEAT)
    assert out.pred_features.shape == (batch, _FEAT)
    # bf16 operands / precomposed weights with f32 accumulation vs full-f32 reference.
    assert jnp.allclose(out.pi_logits, ref_pi, atol=5e-2, rtol=5e-2)
    assert jnp.allclose(out.features, ref_feat, atol=5e-2, rtol=5e-2)
    assert jnp.allclose(out.pred_features, ref_pred, atol=5e-2, rtol=5e-2)

    print("KERNEL_OK")
</pallas_src>

<mosaic_0001>
module attributes {stable_mosaic.version = 11 : i64} {
  func.func @_icm_kernel(%arg0: i32, %arg1: memref<2x16x16xbf16, #tpu.memory_space<vmem>>, %arg2: memref<16x1xi32, #tpu.memory_space<vmem>>, %arg3: memref<16x128xbf16, #tpu.memory_space<vmem>>, %arg4: memref<1x128xf32, #tpu.memory_space<vmem>>, %arg5: memref<128x128xbf16, #tpu.memory_space<vmem>>, %arg6: memref<1x128xf32, #tpu.memory_space<vmem>>, %arg7: memref<128x136xbf16, #tpu.memory_space<vmem>>, %arg8: memref<1x136xf32, #tpu.memory_space<vmem>>, %arg9: memref<16x64xbf16, #tpu.memory_space<vmem>>, %arg10: memref<16x256xf32, #tpu.memory_space<vmem>>) attributes {dimension_semantics = [#tpu.dimension_semantics<parallel>], iteration_bounds = array<i64: 1>, scalar_prefetch = 0 : i64, scratch_operands = 0 : i64, tpu.core_type = #tpu.core_type<tc>, window_params = [{transform_indices = @transform_0, window_bounds = array<i64: 2, 16, 16>}, {transform_indices = @transform_1, window_bounds = array<i64: 16, 1>}, {pipeline_mode = #tpu.pipeline_mode<synchronous>, transform_indices = @transform_2, window_bounds = array<i64: 16, 128>}, {pipeline_mode = #tpu.pipeline_mode<synchronous>, transform_indices = @transform_3, window_bounds = array<i64: 1, 128>}, {pipeline_mode = #tpu.pipeline_mode<synchronous>, transform_indices = @transform_4, window_bounds = array<i64: 128, 128>}, {pipeline_mode = #tpu.pipeline_mode<synchronous>, transform_indices = @transform_5, window_bounds = array<i64: 1, 128>}, {pipeline_mode = #tpu.pipeline_mode<synchronous>, transform_indices = @transform_6, window_bounds = array<i64: 128, 136>}, {pipeline_mode = #tpu.pipeline_mode<synchronous>, transform_indices = @transform_7, window_bounds = array<i64: 1, 136>}, {pipeline_mode = #tpu.pipeline_mode<synchronous>, transform_indices = @transform_8, window_bounds = array<i64: 16, 64>}, {transform_indices = @transform_9, window_bounds = array<i64: 16, 256>}]} {
    %c0 = arith.constant 0 : index
    %c0_0 = arith.constant 0 : index
    %c0_1 = arith.constant 0 : index
    %0 = vector.load %arg1[%c0, %c0_0, %c0_1] : memref<2x16x16xbf16, #tpu.memory_space<vmem>>, vector<2x16x16xbf16>
    %1 = vector.shape_cast %0 : vector<2x16x16xbf16> to vector<32x16xbf16>
    %c0_2 = arith.constant 0 : index
    %c0_3 = arith.constant 0 : index
    %2 = vector.load %arg3[%c0_2, %c0_3] : memref<16x128xbf16, #tpu.memory_space<vmem>>, vector<16x128xbf16>
    %cst = arith.constant dense<0.000000e+00> : vector<32x128xf32>
    %3 = tpu.matmul %1, %2, %cst {dimension_numbers = #tpu.dot_dimension_numbers<[1], [0], [0], [1], [0, 0, 1, 1], [], []>} : vector<32x16xbf16>, vector<16x128xbf16>, vector<32x128xf32> -> vector<32x128xf32>
    %c0_4 = arith.constant 0 : index
    %c0_5 = arith.constant 0 : index
    %4 = vector.load %arg4[%c0_4, %c0_5] : memref<1x128xf32, #tpu.memory_space<vmem>>, vector<1x128xf32>
    %5 = vector.broadcast %4 : vector<1x128xf32> to vector<32x128xf32>
    %6 = arith.addf %3, %5 : vector<32x128xf32>
    %cst_6 = arith.constant 0.000000e+00 : f32
    %7 = vector.broadcast %cst_6 : f32 to vector<32x128xf32>
    %8 = arith.maximumf %6, %7 : vector<32x128xf32>
    %9 = arith.truncf %8 : vector<32x128xf32> to vector<32x128xbf16>
    %c0_7 = arith.constant 0 : index
    %c0_8 = arith.constant 0 : index
    %10 = vector.load %arg5[%c0_7, %c0_8] : memref<128x128xbf16, #tpu.memory_space<vmem>>, vector<128x128xbf16>
    %cst_9 = arith.constant dense<0.000000e+00> : vector<32x128xf32>
    %11 = tpu.matmul %9, %10, %cst_9 {dimension_numbers = #tpu.dot_dimension_numbers<[1], [0], [0], [1], [0, 0, 1, 1], [], []>} : vector<32x128xbf16>, vector<128x128xbf16>, vector<32x128xf32> -> vector<32x128xf32>
    %c0_10 = arith.constant 0 : index
    %c0_11 = arith.constant 0 : index
    %12 = vector.load %arg6[%c0_10, %c0_11] : memref<1x128xf32, #tpu.memory_space<vmem>>, vector<1x128xf32>
    %13 = vector.broadcast %12 : vector<1x128xf32> to vector<32x128xf32>
    %14 = arith.addf %11, %13 : vector<32x128xf32>
    %cst_12 = arith.constant 0.000000e+00 : f32
    %15 = vector.broadcast %cst_12 : f32 to vector<32x128xf32>
    %16 = arith.maximumf %14, %15 : vector<32x128xf32>
    %17 = arith.truncf %16 : vector<32x128xf32> to vector<32x128xbf16>
    %c0_13 = arith.constant 0 : index
    %c0_14 = arith.constant 0 : index
    %18 = vector.load %arg7[%c0_13, %c0_14] : memref<128x136xbf16, #tpu.memory_space<vmem>>, vector<128x136xbf16>
    %cst_15 = arith.constant dense<0.000000e+00> : vector<32x136xf32>
    %19 = tpu.matmul %17, %18, %cst_15 {dimension_numbers = #tpu.dot_dimension_numbers<[1], [0], [0], [1], [0, 0, 1, 1], [], []>} : vector<32x128xbf16>, vector<128x136xbf16>, vector<32x136xf32> -> vector<32x136xf32>
    %c0_16 = arith.constant 0 : index
    %c0_17 = arith.constant 0 : index
    %20 = vector.load %arg8[%c0_16, %c0_17] : memref<1x136xf32, #tpu.memory_space<vmem>>, vector<1x136xf32>
    %21 = vector.broadcast %20 : vector<1x136xf32> to vector<32x136xf32>
    %22 = arith.addf %19, %21 : vector<32x136xf32>
    %23 = vector.extract_strided_slice %22 {offsets = [0, 0], sizes = [16, 136], strides = [1, 1]} : vector<32x136xf32> to vector<16x136xf32>
    %24 = vector.extract_strided_slice %22 {offsets = [16, 0], sizes = [16, 136], strides = [1, 1]} : vector<32x136xf32> to vector<16x136xf32>
    %25 = vector.extract_strided_slice %24 {offsets = [0, 0], sizes = [16, 64], strides = [1, 1]} : vector<16x136xf32> to vector<16x64xf32>
    %26 = vector.extract_strided_slice %23 {offsets = [0, 64], sizes = [16, 64], strides = [1, 1]} : vector<16x136xf32> to vector<16x64xf32>
    %27 = vector.extract_strided_slice %23 {offsets = [0, 128], sizes = [16, 4], strides = [1, 1]} : vector<16x136xf32> to vector<16x4xf32>
    %28 = vector.extract_strided_slice %24 {offsets = [0, 132], sizes = [16, 4], strides = [1, 1]} : vector<16x136xf32> to vector<16x4xf32>
    %29 = tpu.iota {dimensions = array<i32: 1>} : vector<16x16xi32>
    %c0_18 = arith.constant 0 : index
    %c0_19 = arith.constant 0 : index
    %30 = vector.load %arg2[%c0_18, %c0_19] : memref<16x1xi32, #tpu.memory_space<vmem>>, vector<16x1xi32>
    %31 = vector.broadcast %30 : vector<16x1xi32> to vector<16x16xi32>
    %32 = arith.cmpi eq, %29, %31 : vector<16x16xi32>
    %33 = arith.extui %32 : vector<16x16xi1> to vector<16x16xi32>
    %34 = arith.sitofp %33 : vector<16x16xi32> to vector<16x16xf32>
    %35 = arith.truncf %34 : vector<16x16xf32> to vector<16x16xbf16>
    %c0_20 = arith.constant 0 : index
    %c0_21 = arith.constant 0 : index
    %36 = vector.load %arg9[%c0_20, %c0_21] : memref<16x64xbf16, #tpu.memory_space<vmem>>, vector<16x64xbf16>
    %cst_22 = arith.constant dense<0.000000e+00> : vector<16x64xf32>
    %37 = tpu.matmul %35, %36, %cst_22 {dimension_numbers = #tpu.dot_dimension_numbers<[1], [0], [0], [1], [0, 0, 1, 1], [], []>} : vector<16x16xbf16>, vector<16x64xbf16>, vector<16x64xf32> -> vector<16x64xf32>
    %38 = arith.addf %26, %37 : vector<16x64xf32>
    %39 = arith.addf %27, %28 : vector<16x4xf32>
    %cst_23 = arith.constant 0.000000e+00 : f32
    %40 = vector.broadcast %cst_23 : f32 to vector<16x124xf32>
    %41 = tpu.concatenate %25, %38, %39, %40 in 1 : vector<16x64xf32>, vector<16x64xf32>, vector<16x4xf32>, vector<16x124xf32> -> vector<16x256xf32>
    %c0_24 = arith.constant 0 : index
    %c0_25 = arith.constant 0 : index
    %42 = vector.load %arg10[%c0_24, %c0_25] : memref<16x256xf32, #tpu.memory_space<vmem>>, vector<16x256xf32>
    tpu.vector_store %arg10[%c0_24, %c0_25], %41 {strides = array<i32>} : memref<16x256xf32, #tpu.memory_space<vmem>>, vector<16x256xf32>,
    return
  }
  func.func @transform_0(%arg0: i32) -> (i32, i32, i32) {
    %c0_i32 = arith.constant 0 : i32
    %c0_i32_0 = arith.constant 0 : i32
    %c0_i32_1 = arith.constant 0 : i32
    return %c0_i32, %arg0, %c0_i32_0 : i32, i32, i32
  }
  func.func @transform_1(%arg0: i32) -> (i32, i32) {
    %c0_i32 = arith.constant 0 : i32
    %c0_i32_0 = arith.constant 0 : i32
    return %arg0, %c0_i32 : i32, i32
  }
  func.func @transform_2(%arg0: i32) -> (i32, i32) {
    %c0_i32 = arith.constant 0 : i32
    %c0_i32_0 = arith.constant 0 : i32
    %c0_i32_1 = arith.constant 0 : i32
    return %c0_i32, %c0_i32_0 : i32, i32
  }
  func.func @transform_3(%arg0: i32) -> (i32, i32) {
    %c0_i32 = arith.constant 0 : i32
    %c0_i32_0 = arith.constant 0 : i32
    %c0_i32_1 = arith.constant 0 : i32
    return %c0_i32, %c0_i32_0 : i32, i32
  }
  func.func @transform_4(%arg0: i32) -> (i32, i32) {
    %c0_i32 = arith.constant 0 : i32
    %c0_i32_0 = arith.constant 0 : i32
    %c0_i32_1 = arith.constant 0 : i32
    return %c0_i32, %c0_i32_0 : i32, i32
  }
  func.func @transform_5(%arg0: i32) -> (i32, i32) {
    %c0_i32 = arith.constant 0 : i32
    %c0_i32_0 = arith.constant 0 : i32
    %c0_i32_1 = arith.constant 0 : i32
    return %c0_i32, %c0_i32_0 : i32, i32
  }
  func.func @transform_6(%arg0: i32) -> (i32, i32) {
    %c0_i32 = arith.constant 0 : i32
    %c0_i32_0 = arith.constant 0 : i32
    %c0_i32_1 = arith.constant 0 : i32
    return %c0_i32, %c0_i32_0 : i32, i32
  }
  func.func @transform_7(%arg0: i32) -> (i32, i32) {
    %c0_i32 = arith.constant 0 : i32
    %c0_i32_0 = arith.constant 0 : i32
    %c0_i32_1 = arith.constant 0 : i32
    return %c0_i32, %c0_i32_0 : i32, i32
  }
  func.func @transform_8(%arg0: i32) -> (i32, i32) {
    %c0_i32 = arith.constant 0 : i32
    %c0_i32_0 = arith.constant 0 : i32
    %c0_i32_1 = arith.constant 0 : i32
    return %c0_i32, %c0_i32_0 : i32, i32
  }
  func.func @transform_9(%arg0: i32) -> (i32, i32) {
    %c0_i32 = arith.constant 0 : i32
    %c0_i32_0 = arith.constant 0 : i32
    return %arg0, %c0_i32 : i32, i32
  }
}

</mosaic_0001>

<bundles_post_ra>
// kernel: icm_mlp_net_forward.1
= control target key start
LH: loop header
LB: loop body
LE: loop exit
PB: predicated region body
PF: predicated region fallthrough
CT: control target
= control target key end

     0   :  { %vm62_vm0 = vcmask 130048   ;;  %v638_v1 = vmov 0   ;;  %v639_v14 = vmov 0.0   ;;  %v268_v32 = vlaneseq  ;;  %s642_s21 = smov 124   ;;  %s810_s2 = inlined_call_operand.vmem [shape: bf16[16,128], index: 2, kind: input, shape index: {}]   ;;  %s811_s0 = inlined_call_operand.vmem [shape: bf16[2,16,16], index: 0, kind: input, shape index: {}]   ;;  %s812_s4 = inlined_call_operand.vmem [shape: bf16[128,128], index: 4, kind: input, shape index: {}]   ;;  %s813_s1 = inlined_call_operand.vmem [shape: s32[16,1], index: 1, kind: input, shape index: {}]   ;;  %s814_s8 = inlined_call_operand.vmem [shape: bf16[16,64], index: 8, kind: input, shape index: {}]   ;;  %s815_s6 = inlined_call_operand.vmem [shape: bf16[128,136], index: 6, kind: input, shape index: {}]   ;;  %s816_s3 = inlined_call_operand.vmem [shape: f32[1,128], index: 3, kind: input, shape index: {}]   ;;  %s817_s5 = inlined_call_operand.vmem [shape: f32[1,128], index: 5, kind: input, shape index: {}]   ;;  %s818_s7 = inlined_call_operand.vmem [shape: f32[1,136], index: 7, kind: input, shape index: {}]   ;;  %s819_s9 = inlined_call_operand.vmem [shape: f32[16,256], index: 9, kind: output, shape index: {}]  }
   0x1   :  { %v602_v0 = vld [vmem:[%s810_s2] sm:$0xff]   ;;  %601 = vset.pattern.permute.xlu0 %v638_v1  ;;  %v604_v3 = vld [vmem:[%s811_s0 + $0x8] sm:$0xff]   ;;  %v607_v8 = vld [vmem:[%s812_s4 + $0x10] sm:$0xff]   ;;  %vm640_vm3 = vmmov 0   ;;  %vm500_vm4 = vcmask 523264   ;;  %vm503_vm5 = vcmask 31744  }
   0x2   :  { %v603_v2 = vld [vmem:[%s811_s0] sm:$0xff]   ;;  %564 = vmatprep.subr.bf16.mxu0 %v602_v0  ;;  %v606_v6 = vld [vmem:[%s812_s4 + $0x8] sm:$0xff]   ;;  %v608_v9 = vld [vmem:[%s812_s4 + $0x18] sm:$0xff]   ;;  %v412_v40 = vand.u32 127, %v268_v32 }
   0x3   :  { %565 = vmatpush3.bf16.msra.mxu0 %v602_v0  ;;  %566 = vmatprep.mubr.msk.bf16.mxu0 %vm62_vm0, %v603_v2  ;;  %v605_v4 = vld [vmem:[%s812_s4] sm:$0xff]   ;;  %v414_v7 = vld [vmem:[%s813_s1 + $0x8] sm:$0xff]  ;;  %v611_v12 = vld [vmem:[%s812_s4 + $0x30] sm:$0xff]  }
   0x4   :  { %v413_v5 = vld [vmem:[%s813_s1] sm:$0xff]  ;;  %570 = vmatprep.subr.bf16.mxu1 %v605_v4  ;;  %v610_v11 = vld [vmem:[%s812_s4 + $0x28] sm:$0xff]   ;;  %v612_v13 = vld [vmem:[%s812_s4 + $0x38] sm:$0xff]  }
   0x5   :  { %416 = vperm.xlu0 %601, %v413_v5   ;;  %571 = vmatpush3.bf16.msra.mxu1 %v605_v4  ;;  %v609_v10 = vld [vmem:[%s812_s4 + $0x20] sm:$0xff]   ;;  %v619_v17 = vld [vmem:[%s815_s6 + $0x14] ss:$8 sps:$4 sm:$0xff]   ;;  %v617_v18 = vld [vmem:[%s815_s6 + $0x10] ss:$8 sps:$4 sm:$0xff]  }
   0x6   :  { %567 = vmatmul.mubr.msk.bf16.vlgmr.msra.gmra.mrb[0].mxu0 %vm62_vm0, %v604_v3  ;;  %572 = vmatprep.subr.bf16.mxu1 %v606_v6  ;;  %v614_v15 = vld [vmem:[%s815_s6] ss:$8 sps:$4 sm:$0xff]   ;;  %v616_v16 = vld [vmem:[%s815_s6 + $0x4] ss:$8 sps:$4 sm:$0xff]   ;;  %v625_v21 = vld [vmem:[%s815_s6 + $0x34] ss:$8 sps:$4 sm:$0xff]  }
   0x7   :  { %390 = vmatprep.mubr.bf16.mxu0 %v638_v1  ;;  %358 = vmatprep.subr.bf16.mxu0 %v616_v16  ;;  %v622_v19 = vld [vmem:[%s815_s6 + $0x24] ss:$8 sps:$4 sm:$0xff]   ;;  %v620_v20 = vld [vmem:[%s815_s6 + $0x20] ss:$8 sps:$4 sm:$0xff]   ;;  %v623_v22 = vld [vmem:[%s815_s6 + $0x30] ss:$8 sps:$4 sm:$0xff]  }
   0x8   :  { %359 = vmatpush1.bf16.msra.mxu0 %v614_v15  ;;  %v628_v23 = vld [vmem:[%s815_s6 + $0x44] ss:$8 sps:$4 sm:$0xff]   ;;  %v626_v24 = vld [vmem:[%s815_s6 + $0x40] ss:$8 sps:$4 sm:$0xff]   ;;  %v631_v25 = vld [vmem:[%s815_s6 + $0x54] ss:$8 sps:$4 sm:$0xff]  }
   0x9   :  { %419 = vperm.xlu0 %601, %v414_v7   ;;  %573 = vmatpush3.bf16.msra.mxu1 %v606_v6  ;;  %v629_v26 = vld [vmem:[%s815_s6 + $0x50] ss:$8 sps:$4 sm:$0xff]   ;;  %v514_v27 = vld [vmem:[%s816_s3] ss:$0 sm:$0xff]  ;;  %v634_v50 = vld [vmem:[%s815_s6 + $0x64] ss:$8 sps:$4 sm:$0xff]  }
   0xa   :  { %574 = vmatprep.subr.bf16.mxu1 %v607_v8  ;;  %360 = vmatprep.subr.bf16.mxu0 %v619_v17  ;;  %v613_v46 = vld [vmem:[%s814_s8] sm:$0xff]   ;;  %v637_v52 = vld [vmem:[%s815_s6 + $0x74] ss:$8 sps:$4 sm:$0xff]   ;;  %v635_v53 = vld [vmem:[%s815_s6 + $0x70] ss:$8 sps:$4 sm:$0xff]  }
   0xb   :  { %v632_v51 = vld [vmem:[%s815_s6 + $0x60] ss:$8 sps:$4 sm:$0xff]   ;;  %s641_s6 = smov 64  }
   0xc   :  { %361 = vmatpush1.bf16.msra.mxu0 %v617_v18  ;;  %v520_v54 = vld [vmem:[%s817_s5] ss:$0 sm:$0xff] }
   0xd   :  { %575 = vmatpush3.bf16.msra.mxu1 %v607_v8  ;;  %362 = vmatprep.subr.bf16.mxu0 %v622_v19 }
   0xe   :  { %576 = vmatprep.subr.bf16.mxu1 %v608_v9 }
  0x10   :  { %363 = vmatpush1.bf16.msra.mxu0 %v620_v20 }
  0x11   :  { %577 = vmatpush3.bf16.msra.mxu1 %v608_v9  ;;  %364 = vmatprep.subr.bf16.mxu0 %v625_v21 }
  0x12   :  { %578 = vmatprep.subr.bf16.mxu1 %v609_v10 }
  0x14   :  { %365 = vmatpush1.bf16.msra.mxu0 %v623_v22 }
  0x15   :  { %579 = vmatpush3.bf16.msra.mxu1 %v609_v10  ;;  %366 = vmatprep.subr.bf16.mxu0 %v628_v23  ;;  %v269_v10 = vshrl.u32 %v268_v32, 7 }
  0x16   :  { %580 = vmatprep.subr.bf16.mxu1 %v610_v11 }
  0x18   :  { %367 = vmatpush1.bf16.msra.mxu0 %v626_v24 }
  0x19   :  { %581 = vmatpush3.bf16.msra.mxu1 %v610_v11  ;;  %368 = vmatprep.subr.bf16.mxu0 %v631_v25  ;;  %v270_v11 = vsub.s32 0, %v269_v10 }
  0x1a   :  { %582 = vmatprep.subr.bf16.mxu1 %v611_v12 }
  0x1c   :  { %369 = vmatpush1.bf16.msra.mxu0 %v629_v26 }
  0x1d   :  { %583 = vmatpush3.bf16.msra.mxu1 %v611_v12  ;;  %370 = vmatprep.subr.bf16.mxu0 %v634_v50  ;;  %v274_v12 = vsub.s32 1, %v269_v10 }
  0x1e   :  { %584 = vmatprep.subr.bf16.mxu1 %v612_v13 }
  0x20   :  { %371 = vmatpush1.bf16.msra.mxu0 %v632_v51 }
  0x21   :  { %585 = vmatpush3.bf16.msra.mxu1 %v612_v13  ;;  %372 = vmatprep.subr.bf16.mxu0 %v637_v52  ;;  %v266_v13 = vld [vmem:[%s818_s7] sm:$0x3] }
  0x22   :  { %590 = vmatprep.subr.bf16.mxu1 %v639_v14  ;;  %v275_v15 = vrot.slane %v266_v13, %v274_v12 }
  0x24   :  { %373 = vmatpush1.bf16.msra.mxu0 %v635_v53 }
  0x84   :  { %v417_v29 = vpop.permute.xlu0 %416 }
  0x85   :  { %vm421_vm1 = vcmp.eq.s32.totalorder %v412_v40, %v417_v29 }
  0x86   :  { %v545_v47 = vsel %vm421_vm1, 1.0, %v639_v14 }
  0x88   :  { %v420_v43 = vpop.permute.xlu0 %419 }
  0x89   :  { %vm422_vm2 = vcmp.eq.s32.totalorder %v412_v40, %v420_v43 }
  0x8a   :  { %v546_v48 = vsel %vm422_vm2, 1.0, %v639_v14 }
  0x8b   :  { %v427_v49 = vpack.c.bf16 %v546_v48, %v545_v47 }
  0xd9   :  { %v568_v28 = vpop.f32.mrb[0].mxu0 }
  0xda   :  { %v112_v30 = vadd.f32 %v568_v28, %v514_v27  ;;  %v103_v31 = vpop.f32.mrb[1].mxu0 }
  0xdb   :  { %v104_v33 = vadd.f32 %v514_v27, %v103_v31  ;;  %v569_v34 = vpop.f32.mrb[2].mxu0 }
  0xdc   :  { %v115_v35 = vadd.f32 %v569_v34, %v514_v27  ;;  %v106_v36 = vpop.f32.mrb[3].mxu0  ;;  %v120_v38 = vmax.f32 %v112_v30, 0.0 }
  0xdd   :  { %v107_v37 = vadd.f32 %v514_v27, %v106_v36  ;;  %v118_v41 = vmax.f32 %v104_v33, 0.0 }
  0xde   :  { %v121_v39 = vmax.f32 %v115_v35, 0.0 }
  0xdf   :  { %v119_v42 = vmax.f32 %v107_v37, 0.0 }
  0xe0   :  { %v123_v44 = vpack.c.bf16 %v121_v39, %v120_v38 }
  0xe1   :  { %v122_v45 = vpack.c.bf16 %v119_v42, %v118_v41 }
  0xe3   :  { %586 = vmatprep.mubr.bf16.mxu1 %v122_v45 }
  0xe4   :  { %587 = vmatmul.mubr.bf16.vlgmr.msra.gmra.mrb[0].mxu1 %v123_v44 }
  0xe5   :  { %591 = vmatpush3.bf16.msra.mxu1 %v613_v46  ;;  %592 = vmatprep.mubr.msk.bf16.mxu1 %vm640_vm3, %v639_v14  ;;  %v271_v14 = vrot.slane %v266_v13, %v270_v11 }
  0xec   :  { %593 = vmatmul.mubr.msk.bf16.vlgmr.msra.gmra.mrb[4].mxu1 %vm62_vm0, %v427_v49 }
 0x1b7   :  { %v588_v55 = vpop.f32.mrb[0].mxu1 }
 0x1b8   :  { %v238_v56 = vadd.f32 %v588_v55, %v520_v54  ;;  %v229_v57 = vpop.f32.mrb[1].mxu1 }
 0x1b9   :  { %v230_v58 = vadd.f32 %v520_v54, %v229_v57  ;;  %v589_v59 = vpop.f32.mrb[2].mxu1 }
 0x1ba   :  { %v241_v60 = vadd.f32 %v589_v59, %v520_v54  ;;  %v232_v61 = vpop.f32.mrb[3].mxu1  ;;  %v246_v63 = vmax.f32 %v238_v56, 0.0 }
 0x1bb   :  { %v233_v62 = vadd.f32 %v520_v54, %v232_v61  ;;  %v244_v2 = vmax.f32 %v230_v58, 0.0 }
 0x1bc   :  { %v247_v0 = vmax.f32 %v241_v60, 0.0 }
 0x1bd   :  { %v245_v3 = vmax.f32 %v233_v62, 0.0 }
 0x1be   :  { %v249_v4 = vpack.c.bf16 %v247_v0, %v246_v63 }
 0x1bf   :  { %v248_v5 = vpack.c.bf16 %v245_v3, %v244_v2  ;;  %v473_v6 = vpop.f32.mrb[4].mxu1 }
 0x1c0   :  { %482 = vrot.lane.b32.xlu1 %v473_v6, %s641_s6  ;;  %v594_v7 = vpop.f32.mrb[5].mxu1 }
 0x1c1   :  { %391 = vmatmul.mubr.bf16.vlgmr.msra.gmra.mrb[4].mxu0 %v248_v5  ;;  %v476_v8 = vpop.f32.mrb[6].mxu1 }
 0x1c2   :  { %400 = vmatprep.mubr.bf16.mxu0 %v638_v1  ;;  %v595_v9 = vpop.f32.mrb[7].mxu1 }
 0x1c4   :  { %484 = vrot.lane.b32.xlu1 %v476_v8, %s641_s6 }
 0x1c9   :  { %401 = vmatmul.mubr.bf16.gmra.mrb[8].mxu0 %v249_v4 }
 0x232   :  { %v483_v19 = vpop.permute.xlu1 %482 }
 0x236   :  { %v485_v24 = vpop.permute.xlu1 %484 }
 0x294   :  { %v392_v16 = vpop.f32.mrb[4].mxu0 }
 0x295   :  { %v393_v17 = vadd.f32 %v392_v16, %v271_v14  ;;  %v394_v18 = vpop.f32.mrb[5].mxu0 }
 0x296   :  { %v395_v20 = vadd.f32 %v394_v18, %v275_v15  ;;  %v396_v21 = vpop.f32.mrb[6].mxu0 }
 0x297   :  { %v397_v22 = vadd.f32 %v396_v21, %v271_v14  ;;  %v398_v1 = vpop.f32.mrb[7].mxu0  ;;  %v488_v26 = vadd.f32 %v483_v19, %v393_v17 }
 0x298   :  { %v399_v23 = vadd.f32 %v398_v1, %v275_v15 }
 0x299   :  { %v489_v31 = vadd.f32 %v485_v24, %v397_v22 }
 0x29c   :  { %v402_v25 = vpop.f32.mrb[8].mxu0 }
 0x29d   :  { %v403_v27 = vadd.f32 %v402_v25, %v271_v14  ;;  %v404_v28 = vpop.f32.mrb[9].mxu0 }
 0x29e   :  { %v405_v29 = vadd.f32 %v404_v28, %v275_v15  ;;  %v406_v30 = vpop.f32.mrb[10].mxu0 }
 0x29f   :  { %v501_v32 = vsel %vm500_vm4, %v403_v27, %v488_v26  ;;  %v407_v33 = vadd.f32 %v406_v30, %v271_v14  ;;  %v408_v34 = vpop.f32.mrb[11].mxu0 }
 0x2a0   :  { %506 = vst [vmem:[%s819_s9] sm:$0xff] %v501_v32  ;;  %v409_v35 = vadd.f32 %v408_v34, %v275_v15  ;;  %492 = vrot.lane.b32.xlu0 %v405_v29, %s642_s21 }
 0x2a1   :  { %v502_v36 = vsel %vm500_vm4, %v407_v33, %v489_v31 }
 0x2a2   :  { %508 = vst [vmem:[%s819_s9 + $0x10] sm:$0xff] %v502_v36  ;;  %494 = vrot.lane.b32.xlu1 %v409_v35, %s642_s21 }
 0x312   :  { %v493_v37 = vpop.permute.xlu0 %492 }
 0x313   :  { %v498_v38 = vadd.f32 %v493_v37, %v395_v20 }
 0x314   :  { %v495_v39 = vpop.permute.xlu1 %494 }
 0x315   :  { %v504_v40 = vsel %vm503_vm5, %v498_v38, 0.0  ;;  %v499_v41 = vadd.f32 %v495_v39, %v399_v23 }
 0x316   :  { %507 = vst [vmem:[%s819_s9 + $0x8] sm:$0xff] %v504_v40 }
 0x317   :  { %v505_v42 = vsel %vm503_vm5, %v499_v41, 0.0 }
 0x318   :  { %509 = vst [vmem:[%s819_s9 + $0x18] sm:$0xff] %v505_v42 }

</bundles_post_ra>
